<compile_context>
chip_gen: v7x
topology: tpu7x:2x2x1
jax: 0.10.0
libtpu: 0.0.40
codegen_flags: <defaults>
</compile_context>

<pallas_src>
import numpy as np
import jax
import jax.numpy as jnp
from jax.experimental import pallas as pl
from jax.experimental.pallas import tpu as pltpu


def _round_up(x, m):
    return ((x + m - 1) // m) * m


def _choose_spatial_tile(HW, N, tm_max):
    """Pick a spatial tile `tm` with HW % tm == 0 (no HBM padding round-trip).

    Returns (tm, n_tiles), or (None, None) if padding is unavoidable
    (HW > tm_max and HW not 128-lane aligned — rare for U-Net shapes)."""
    if HW % 128 != 0:
        if HW <= tm_max:
            return HW, 1                      # single full-extent block (legal)
        return None, None                     # fall back to padding
    hw128 = HW // 128
    cap = max(1, tm_max // 128)
    d = 1
    for cand in range(min(cap, hw128), 0, -1):
        if hw128 % cand == 0:                 # largest 128-multiple tile dividing HW
            d = cand
            break
    tm, n_tiles = d * 128, hw128 // d
    # v7x megacore: make sure there are >= 2 parallel grid steps when possible.
    if N * n_tiles < 2 and tm % 256 == 0:
        tm //= 2
        n_tiles *= 2
    return tm, n_tiles


# ----------------------------------------------------------------------------
# Pallas kernel: channels-first attention gate over a [C, T] spatial tile
# ----------------------------------------------------------------------------
def attention_gate_kernel(xdec_ref, xenc_ref, wgT_ref, waT_ref, bga_ref,
                          wpT_ref, bp_ref, out_ref):
    # Tiles are channels-first and lane-dense (T on the 128-lane axis).
    # Activations stay in their native dtype (bf16 on the production path);
    # the MXU accumulates in f32 via preferred_element_type.
    xd = xdec_ref[0]                                   # [Cdec, T]
    xe = xenc_ref[0]                                   # [Cenc, T]

    # Fused gate + act branches (1x1 convs with folded BN), combined bias.
    h = (jnp.dot(wgT_ref[...], xd, preferred_element_type=jnp.float32)
         + jnp.dot(waT_ref[...], xe, preferred_element_type=jnp.float32)
         + bga_ref[...])                               # [Cint, T] f32
    h = jnp.maximum(h, 0.0)                            # ReLU

    # psi branch: 1x1 conv (+ folded BN) -> 1 channel, sigmoid (EUP).
    p = jnp.dot(wpT_ref[...], h, preferred_element_type=jnp.float32) + bp_ref[0]
    p = jax.nn.sigmoid(p)                              # [1, T] f32

    # Gate the encoder features in the I/O dtype (no f32 temporaries for bf16).
    out_ref[0] = (p.astype(xe.dtype) * xe).astype(out_ref.dtype)


def attention_gate_pallas(xd, xe, wgT, waT, bga, wpT, bp, *, tm_max=8192):
    """xd: [N, Cdec, HW], xe: [N, Cenc, HW]. Returns [N, Cenc, HW] (dtype of xe)."""
    N, Cdec, HW = xd.shape
    _, Cenc, _ = xe.shape
    Cint = wgT.shape[0]

    tm, n_tiles = _choose_spatial_tile(HW, N, tm_max)
    pad_cols = 0
    if tm is None:
        # Rare fallback (large, non-128-aligned HW): pad through HBM.
        n_tiles = pl.cdiv(HW, tm_max)
        tm = _round_up(pl.cdiv(HW, n_tiles), 128)
        pad_cols = n_tiles * tm - HW
        pad = ((0, 0), (0, 0), (0, pad_cols))
        xd = jnp.pad(xd, pad)
        xe = jnp.pad(xe, pad)

    # Scoped-VMEM budget that scales with the tile (lets v7x users raise tm_max
    # to 16K-32K columns); never below the 32 MiB default, capped well under
    # v7x's 64 MiB physical VMEM.
    itemsize = max(xd.dtype.itemsize, xe.dtype.itemsize)
    est = (2 * tm * (Cdec + 2 * Cenc) * itemsize       # double-buffered xd/xe/out
           + 6 * tm * Cint * 4                          # h + f32 temporaries
           + (1 << 20))
    vmem_limit = int(min(60 << 20, max(32 << 20, est)))

    wmap = lambda n, t: (0, 0)
    out = pl.pallas_call(
        attention_gate_kernel,
        out_shape=jax.ShapeDtypeStruct((N, Cenc, HW + pad_cols), xe.dtype),
        grid_spec=pltpu.PrefetchScalarGridSpec(
            num_scalar_prefetch=0,
            grid=(N, n_tiles),
            in_specs=[
                pl.BlockSpec((1, Cdec, tm), lambda n, t: (n, 0, t)),   # x_dec tile
                pl.BlockSpec((1, Cenc, tm), lambda n, t: (n, 0, t)),   # x_enc tile
                pl.BlockSpec((Cint, Cdec), wmap),                      # W_gate^T (BN folded)
                pl.BlockSpec((Cint, Cenc), wmap),                      # W_act^T  (BN folded)
                pl.BlockSpec((Cint, 1), wmap),                         # b_gate + b_act
                pl.BlockSpec((1, Cint), wmap),                         # W_psi^T  (BN folded, f32)
                pl.BlockSpec(memory_space=pltpu.MemorySpace.SMEM),     # b_psi scalar in SMEM
            ],
            out_specs=pl.BlockSpec((1, Cenc, tm), lambda n, t: (n, 0, t)),
        ),
        compiler_params=pltpu.CompilerParams(
            dimension_semantics=("parallel", "parallel"),
            vmem_limit_bytes=vmem_limit),
    )(xd, xe, wgT, waT, bga, wpT, bp)

    return out[:, :, :HW] if pad_cols else out


# ----------------------------------------------------------------------------
# Parameter construction (deterministic) + BN folding (glue)
# ----------------------------------------------------------------------------
def make_conv_bn_params(key, c_in, c_out, eps=1e-5):
    """Returns (W [c_in, c_out], b [1, c_out]) with eval-mode BatchNorm folded in.

    Conv1x1: y = x @ W_raw + b_raw
    BN eval: z = gamma*(y - mean)/sqrt(var+eps) + beta
    Folded : z = x @ (W_raw*scale) + (scale*b_raw + shift)
    """
    k = jax.random.split(key, 6)
    w_raw = jax.random.normal(k[0], (c_in, c_out), jnp.float32) * 0.2
    b_raw = jax.random.normal(k[1], (c_out,), jnp.float32) * 0.1
    gamma = 1.0 + 0.1 * jax.random.normal(k[2], (c_out,), jnp.float32)
    beta = 0.1 * jax.random.normal(k[3], (c_out,), jnp.float32)
    run_mean = 0.1 * jax.random.normal(k[4], (c_out,), jnp.float32)
    run_var = jnp.abs(1.0 + 0.1 * jax.random.normal(k[5], (c_out,), jnp.float32))
    scale = gamma / jnp.sqrt(run_var + eps)
    shift = beta - run_mean * scale
    w = w_raw * scale[None, :]
    b = (scale * b_raw + shift)[None, :]
    return w, b


def prepare_gate_params(params, gate_dtype=jnp.float32, act_dtype=jnp.float32):
    """Pack parameters channels-first for the kernel.

    Gate/act weights are pre-cast to the activation dtype (bf16 production path
    feeds native bf16 operands to the MXU, f32 accumulation); biases and the
    tiny psi weight stay f32."""
    wgT = params["wg"].T.astype(gate_dtype)                                # [Cint, Cdec]
    waT = params["wa"].T.astype(act_dtype)                                 # [Cint, Cenc]
    bga = (params["bg"] + params["ba"]).reshape(-1, 1).astype(jnp.float32)  # [Cint, 1]
    wpT = params["wp"].T.astype(jnp.float32)                               # [1, Cint]
    bp = params["bp"].reshape(1).astype(jnp.float32)                       # [1] -> SMEM
    return wgT, waT, bga, wpT, bp


def attention_gate_forward(x_dec, x_enc, params, *, tm_max=8192):
    """x_dec: [N, Cdec, H, W], x_enc: [N, Cenc, H, W] (NCHW, like PyTorch).

    Returns [N, Cenc, H, W] = sigmoid-attention-gated encoder features
    (dtype follows x_enc; pass bf16 inputs for the production bandwidth path).
    """
    N, Cdec, H, W = x_dec.shape
    _, Cenc, _, _ = x_enc.shape
    wgT, waT, bga, wpT, bp = prepare_gate_params(
        params, gate_dtype=x_dec.dtype, act_dtype=x_enc.dtype)
    # NCHW kept as-is: only a trailing reshape (no transpose through HBM).
    xd = x_dec.reshape(N, Cdec, H * W)
    xe = x_enc.reshape(N, Cenc, H * W)
    out = attention_gate_pallas(xd, xe, wgT, waT, bga, wpT, bp, tm_max=tm_max)
    return out.reshape(N, Cenc, H, W)


def attention_gate_reference(x_dec, x_enc, params):
    """Pure-JAX reference (same math, NCHW, f32), for validation."""
    xd = x_dec.astype(jnp.float32)
    xe = x_enc.astype(jnp.float32)
    g = jnp.einsum('nchw,cd->ndhw', xd, params["wg"]) + params["bg"][0][None, :, None, None]
    a = jnp.einsum('nchw,cd->ndhw', xe, params["wa"]) + params["ba"][0][None, :, None, None]
    h = jnp.maximum(a + g, 0.0)
    p = jnp.einsum('nchw,cd->ndhw', h, params["wp"]) + params["bp"][0][None, :, None, None]
    p = jax.nn.sigmoid(p)
    return p * xe


# ----------------------------------------------------------------------------
if __name__ == "__main__":
    # Small shapes consistent with the module:
    #   dim=2, encoder_channels=8, decoder_channels=16,
    #   intermediate_channels=decoder_channels=16 (the default), norm=True.
    N, H, W = 2, 16, 16
    enc_ch, dec_ch = 8, 16
    int_ch = dec_ch  # intermediate_channels=None -> decoder_channels

    root = jax.random.PRNGKey(0)
    k_xd, k_xe, k_gate, k_act, k_psi = jax.random.split(root, 5)

    x_dec = jax.random.normal(k_xd, (N, dec_ch, H, W), jnp.float32)   # decoder input
    x_enc = jax.random.normal(k_xe, (N, enc_ch, H, W), jnp.float32)   # encoder skip

    wg, bg = make_conv_bn_params(k_gate, dec_ch, int_ch)   # gate block
    wa, ba = make_conv_bn_params(k_act, enc_ch, int_ch)    # act block
    wp, bp = make_conv_bn_params(k_psi, int_ch, 1)         # psi block
    params = dict(wg=wg, bg=bg, wa=wa, ba=ba, wp=wp, bp=bp)

    # f32 I/O: tight check against the pure-JAX reference.
    out = jax.block_until_ready(attention_gate_forward(x_dec, x_enc, params))
    ref = jax.block_until_ready(attention_gate_reference(x_dec, x_enc, params))
    assert out.shape == (N, enc_ch, H, W)
    np.testing.assert_allclose(np.asarray(out), np.asarray(ref), rtol=1e-5, atol=1e-5)

    # bf16 I/O: production (bandwidth-saving) path — native bf16 operands on the
    # MXU with f32 accumulation, bf16 stores.
    xd_bf, xe_bf = x_dec.astype(jnp.bfloat16), x_enc.astype(jnp.bfloat16)
    out_bf = jax.block_until_ready(attention_gate_forward(xd_bf, xe_bf, params))
    ref_bf = jax.block_until_ready(attention_gate_reference(xd_bf, xe_bf, params))
    assert out_bf.dtype == jnp.bfloat16
    np.testing.assert_allclose(np.asarray(out_bf, dtype=np.float32),
                               np.asarray(ref_bf, dtype=np.float32),
                               rtol=2e-2, atol=2e-2)

    # Multi-tile spatial grid (HW=256 split into 2x128-lane tiles, no padding).
    out_t = jax.block_until_ready(
        attention_gate_forward(x_dec, x_enc, params, tm_max=128))
    np.testing.assert_allclose(np.asarray(out_t), np.asarray(ref), rtol=1e-5, atol=1e-5)

    # Non-128-aligned spatial extent: single full-extent block, no padding.
    Hs, Ws = 10, 10
    xd_s = jax.random.normal(jax.random.PRNGKey(1), (N, dec_ch, Hs, Ws), jnp.float32)
    xe_s = jax.random.normal(jax.random.PRNGKey(2), (N, enc_ch, Hs, Ws), jnp.float32)
    out_s = jax.block_until_ready(attention_gate_forward(xd_s, xe_s, params))
    ref_s = jax.block_until_ready(attention_gate_reference(xd_s, xe_s, params))
    np.testing.assert_allclose(np.asarray(out_s), np.asarray(ref_s), rtol=1e-5, atol=1e-5)

    # TODO(synk): dropout (train-mode) and train-mode BatchNorm statistics are
    # not modeled; eval-mode BN is folded into the conv weights/biases.
    print("KERNEL_OK")
</pallas_src>

<mosaic_0001>
module attributes {stable_mosaic.version = 11 : i64} {
  func.func @attention_gate_kernel(%arg0: i32, %arg1: i32, %arg2: memref<1x16x256xf32, #tpu.memory_space<vmem>>, %arg3: memref<1x8x256xf32, #tpu.memory_space<vmem>>, %arg4: memref<16x16xf32, #tpu.memory_space<vmem>>, %arg5: memref<16x8xf32, #tpu.memory_space<vmem>>, %arg6: memref<16x1xf32, #tpu.memory_space<vmem>>, %arg7: memref<1x16xf32, #tpu.memory_space<vmem>>, %arg8: memref<1xf32, #tpu.memory_space<smem>>, %arg9: memref<1x8x256xf32, #tpu.memory_space<vmem>>) attributes {dimension_semantics = [#tpu.dimension_semantics<parallel>, #tpu.dimension_semantics<parallel>], iteration_bounds = array<i64: 2, 1>, scalar_prefetch = 0 : i64, scratch_operands = 0 : i64, tpu.core_type = #tpu.core_type<tc>, window_params = [{transform_indices = @transform_0, window_bounds = array<i64: 1, 16, 256>}, {transform_indices = @transform_1, window_bounds = array<i64: 1, 8, 256>}, {pipeline_mode = #tpu.pipeline_mode<synchronous>, transform_indices = @transform_2, window_bounds = array<i64: 16, 16>}, {pipeline_mode = #tpu.pipeline_mode<synchronous>, transform_indices = @transform_3, window_bounds = array<i64: 16, 8>}, {pipeline_mode = #tpu.pipeline_mode<synchronous>, transform_indices = @transform_4, window_bounds = array<i64: 16, 1>}, {pipeline_mode = #tpu.pipeline_mode<synchronous>, transform_indices = @transform_5, window_bounds = array<i64: 1, 16>}, {transform_indices = @transform_6, window_bounds = array<i64: 1>}, {transform_indices = @transform_7, window_bounds = array<i64: 1, 8, 256>}]} {
    %c0 = arith.constant 0 : index
    %c0_0 = arith.constant 0 : index
    %c0_1 = arith.constant 0 : index
    %0 = vector.load %arg2[%c0, %c0_0, %c0_1] : memref<1x16x256xf32, #tpu.memory_space<vmem>>, vector<1x16x256xf32>
    %1 = vector.shape_cast %0 : vector<1x16x256xf32> to vector<16x256xf32>
    %c0_2 = arith.constant 0 : index
    %c0_3 = arith.constant 0 : index
    %c0_4 = arith.constant 0 : index
    %2 = vector.load %arg3[%c0_2, %c0_3, %c0_4] : memref<1x8x256xf32, #tpu.memory_space<vmem>>, vector<1x8x256xf32>
    %3 = vector.shape_cast %2 : vector<1x8x256xf32> to vector<8x256xf32>
    %c0_5 = arith.constant 0 : index
    %c0_6 = arith.constant 0 : index
    %4 = vector.load %arg4[%c0_5, %c0_6] : memref<16x16xf32, #tpu.memory_space<vmem>>, vector<16x16xf32>
    %cst = arith.constant dense<0.000000e+00> : vector<16x256xf32>
    %5 = tpu.matmul %4, %1, %cst {dimension_numbers = #tpu.dot_dimension_numbers<[1], [0], [0], [1], [0, 0, 1, 1], [], []>} : vector<16x16xf32>, vector<16x256xf32>, vector<16x256xf32> -> vector<16x256xf32>
    %c0_7 = arith.constant 0 : index
    %c0_8 = arith.constant 0 : index
    %6 = vector.load %arg5[%c0_7, %c0_8] : memref<16x8xf32, #tpu.memory_space<vmem>>, vector<16x8xf32>
    %cst_9 = arith.constant dense<0.000000e+00> : vector<16x256xf32>
    %7 = tpu.matmul %6, %3, %cst_9 {dimension_numbers = #tpu.dot_dimension_numbers<[1], [0], [0], [1], [0, 0, 1, 1], [], []>} : vector<16x8xf32>, vector<8x256xf32>, vector<16x256xf32> -> vector<16x256xf32>
    %8 = arith.addf %5, %7 : vector<16x256xf32>
    %c0_10 = arith.constant 0 : index
    %c0_11 = arith.constant 0 : index
    %9 = vector.load %arg6[%c0_10, %c0_11] : memref<16x1xf32, #tpu.memory_space<vmem>>, vector<16x1xf32>
    %10 = vector.broadcast %9 : vector<16x1xf32> to vector<16x256xf32>
    %11 = arith.addf %8, %10 : vector<16x256xf32>
    %cst_12 = arith.constant 0.000000e+00 : f32
    %12 = vector.broadcast %cst_12 : f32 to vector<16x256xf32>
    %13 = arith.maximumf %11, %12 : vector<16x256xf32>
    %c0_13 = arith.constant 0 : index
    %c0_14 = arith.constant 0 : index
    %14 = vector.load %arg7[%c0_13, %c0_14] : memref<1x16xf32, #tpu.memory_space<vmem>>, vector<1x16xf32>
    %cst_15 = arith.constant dense<0.000000e+00> : vector<1x256xf32>
    %15 = tpu.matmul %14, %13, %cst_15 {dimension_numbers = #tpu.dot_dimension_numbers<[1], [0], [0], [1], [0, 0, 1, 1], [], []>} : vector<1x16xf32>, vector<16x256xf32>, vector<1x256xf32> -> vector<1x256xf32>
    %c0_16 = arith.constant 0 : index
    %16 = memref.load %arg8[%c0_16] : memref<1xf32, #tpu.memory_space<smem>>
    %17 = vector.broadcast %16 : f32 to vector<1x256xf32>
    %18 = arith.addf %15, %17 : vector<1x256xf32>
    %19 = arith.negf %18 : vector<1x256xf32>
    %20 = math.exp %19 : vector<1x256xf32>
    %cst_17 = arith.constant 1.000000e+00 : f32
    %21 = vector.broadcast %cst_17 : f32 to vector<1x256xf32>
    %22 = arith.addf %21, %20 : vector<1x256xf32>
    %23 = arith.divf %21, %22 : vector<1x256xf32>
    %24 = vector.broadcast %23 : vector<1x256xf32> to vector<8x256xf32>
    %25 = arith.mulf %24, %3 : vector<8x256xf32>
    %c0_18 = arith.constant 0 : index
    %c0_19 = arith.constant 0 : index
    %c0_20 = arith.constant 0 : index
    %26 = vector.load %arg9[%c0_18, %c0_19, %c0_20] : memref<1x8x256xf32, #tpu.memory_space<vmem>>, vector<1x8x256xf32>
    %27 = vector.shape_cast %26 : vector<1x8x256xf32> to vector<8x256xf32>
    %28 = vector.shape_cast %25 : vector<8x256xf32> to vector<1x8x256xf32>
    tpu.vector_store %arg9[%c0_18, %c0_19, %c0_20], %28 {strides = array<i32>} : memref<1x8x256xf32, #tpu.memory_space<vmem>>, vector<1x8x256xf32>,
    return
  }
  func.func @transform_0(%arg0: i32, %arg1: i32) -> (i32, i32, i32) {
    %c0_i32 = arith.constant 0 : i32
    %c0_i32_0 = arith.constant 0 : i32
    return %arg0, %c0_i32, %arg1 : i32, i32, i32
  }
  func.func @transform_1(%arg0: i32, %arg1: i32) -> (i32, i32, i32) {
    %c0_i32 = arith.constant 0 : i32
    %c0_i32_0 = arith.constant 0 : i32
    return %arg0, %c0_i32, %arg1 : i32, i32, i32
  }
  func.func @transform_2(%arg0: i32, %arg1: i32) -> (i32, i32) {
    %c0_i32 = arith.constant 0 : i32
    %c0_i32_0 = arith.constant 0 : i32
    %c0_i32_1 = arith.constant 0 : i32
    return %c0_i32, %c0_i32_0 : i32, i32
  }
  func.func @transform_3(%arg0: i32, %arg1: i32) -> (i32, i32) {
    %c0_i32 = arith.constant 0 : i32
    %c0_i32_0 = arith.constant 0 : i32
    %c0_i32_1 = arith.constant 0 : i32
    return %c0_i32, %c0_i32_0 : i32, i32
  }
  func.func @transform_4(%arg0: i32, %arg1: i32) -> (i32, i32) {
    %c0_i32 = arith.constant 0 : i32
    %c0_i32_0 = arith.constant 0 : i32
    %c0_i32_1 = arith.constant 0 : i32
    return %c0_i32, %c0_i32_0 : i32, i32
  }
  func.func @transform_5(%arg0: i32, %arg1: i32) -> (i32, i32) {
    %c0_i32 = arith.constant 0 : i32
    %c0_i32_0 = arith.constant 0 : i32
    %c0_i32_1 = arith.constant 0 : i32
    return %c0_i32, %c0_i32_0 : i32, i32
  }
  func.func @transform_6(%arg0: i32, %arg1: i32) -> i32 {
    %c0_i32 = arith.constant 0 : i32
    %c0_i32_0 = arith.constant 0 : i32
    return %c0_i32 : i32
  }
  func.func @transform_7(%arg0: i32, %arg1: i32) -> (i32, i32, i32) {
    %c0_i32 = arith.constant 0 : i32
    %c0_i32_0 = arith.constant 0 : i32
    return %arg0, %c0_i32, %arg1 : i32, i32, i32
  }
}

</mosaic_0001>

<bundles_post_ra>
// kernel: tpu_custom_call.1
= control target key start
LH: loop header
LB: loop body
LE: loop exit
PB: predicated region body
PF: predicated region fallthrough
CT: control target
= control target key end

     0   :  { %s1262_s0 = inlined_call_operand.hbm [shape: f32[2,16,256], index: 0, kind: input, shape index: {}]   ;;  %s1263_s1 = inlined_call_operand.vmem [shape: f32[2,8,256], index: 1, kind: input, shape index: {}]   ;;  %s1264_s2 = inlined_call_operand.vmem [shape: f32[16,16], index: 2, kind: input, shape index: {}]   ;;  %s1265_s3 = inlined_call_operand.vmem [shape: f32[16,8], index: 3, kind: input, shape index: {}]   ;;  %s1266_s4 = inlined_call_operand.vmem [shape: f32[16,1], index: 4, kind: input, shape index: {}]   ;;  %s1267_s5 = inlined_call_operand.vmem [shape: f32[1,16], index: 5, kind: input, shape index: {}]   ;;  %s1268_s6 = inlined_call_operand.<no memory space> [shape: f32[1], index: 6, kind: input, shape index: {}]   ;;  %s1269_s7 = inlined_call_operand.hbm [shape: f32[2,8,256], index: 7, kind: output, shape index: {}]  }
   0x1   :  { %12 = sst [smem:[#allocation2]] %s1268_s6 }
   0x2   :  { %13 = vsyncpa [#allocation4], 0 }
   0x3   :  { %15 = vsyncpa [#allocation4 + $0x1], 0 }
   0x4   :  { %16 = vsyncpa [#allocation5], 0 }
   0x5   :  { %18 = vsyncpa [#allocation5 + $0x1], 0  ;;  %s1049_s26 = smov 0   ;;  %s1051_s27 = smov 0  }
   0x6   :  { %s1053_s28 = smov 0   ;;  %s1055_s29 = smov 0  }
   0x7   :  { %s1057_s30 = smov 0   ;;  %s1059_s8 = smov 0  }
   0x8 LB: > { %s772_s6 = sadd.s32 4294967295, %s998_s8   ;;  %s773_s9 = sadd.s32 4294967294, %s998_s8   ;;  %s998_s8 = sphi %s1059_s8, %s24_s8   ;;  %s994_s30 = sphi %s1057_s30, %s1284_s30   ;;  %s990_s29 = sphi %s1055_s29, %s1283_s29   ;;  %s986_s28 = sphi %s1053_s28, %s1282_s28   ;;  %s982_s27 = sphi %s1051_s27, %s1281_s27   ;;  %s978_s26 = sphi %s1049_s26, %s1280_s26  }
   0x9   : > { %s36_s10 = sadd.s32 1, %s994_s30  ;;  %s45_s11 = sadd.s32 1, %s986_s28 }
   0xa   : > { %p38_p0 = scmp.ge.s32.totalorder %s36_s10, 2  ;;  %p52_p1 = scmp.ne.s32.totalorder %s986_s28, %s982_s27 }
   0xb   : > { %p53_p2 = scmp.eq.s32.totalorder %s998_s8, 0  ;;  %p58_p3 = scmp.ne.s32.totalorder %s982_s27, %s978_s26 }
   0xc   : > { %s1286_s10 = smov (%p38_p0, %s36_s10), 0  ;;  %p59_p5 = scmp.eq.s32.totalorder %s772_s6, 0 }
   0xd   : > { %p1090_p4 = por %p53_p2, %p52_p1  ;;  %s40_s13 = ssub.s32 %s994_s30, %s1286_s10 }
   0xe   : > { %p217_p6 = scmp.eq.s32.totalorder %s772_s6, 1  ;;  %p43_p7 = scmp.eq.s32.totalorder %s40_s13, 0 }
   0xf   : > { %p1096_p8 = por %p59_p5, %p58_p3  ;;  %p223_p10 = scmp.eq.s32.totalorder %s773_s9, 1 }
  0x10   : > { %p1100_p9 = por %p217_p6, %p52_p1  ;;  %p823_p13 = scmp.lt.s32.totalorder %s998_s8, 2 }
  0x11   : > { %s1105_s16 = scalar_select %p43_p7, %s986_s28, %s45_s11  }
  0x12   : > { %s1273_s15 = scalar_select %p1100_p9, 1, 0 }
  0x13   : > { %p1107_p11 = por %p223_p10, %p58_p3  ;;  %s258_s18 = sand.u32 1, %s986_s28  }
  0x14   : > { %s776_s19 = sshll.u32 %s258_s18, 5  ;;  %s796_s20 = sshll.u32 %s994_s30, 9 }
  0x15   : > { %s1274_s17 = scalar_select %p1107_p11, 1, 0 }
  0x16   : > { %s1118_s23 = scalar_lea.hbm %s1262_s0, %s796_s20  ;;  %s262_s24 = scalar_lea.vmem [#allocation3], %s776_s19 }
  0x17   : > { %s271_s25 = sshll.u32 %s262_s24, 4  ;;  %p1124_p0 = pnand %p823_p13, %p1090_p4  ;;  %s1120_s25 = int_to_ptr.vmem [resolvable:$true] %s271_s25 }
  0x18   : > { %s1129_s9 = scalar_lea.sflag [#allocation4], %s258_s18  ;;  %s886_s11 = scalar_lea.hbm %s1118_s23, 512 }
  0x19   : > { %p887_p2 = scmp.ne.s32.totalorder %s1118_s23, %s886_s11  ;;  %p888_p3 = pneg %p1124_p0 }
  0x1a   : > { %s891_s12 = scalar_lea.hbm %s1262_s0, 1024  ;;  %p892_p4 = scmp.lt.u32.totalorder %s1118_s23, %s1262_s0 }
  0x1b   : > { %p889_p5 = pnand %p888_p3, %p887_p2  ;;  %p893_p7 = scmp.lt.u32.totalorder %s891_s12, %s886_s11 }
  0x1c   : > { %p895_p13 = scmp.lt.u32.totalorder %s886_s11, %s1118_s23 }
  0x1d   : > { %p890_p6 = pneg %p889_p5  ;;  %p894_p10 = por %p893_p7, %p892_p4 }
  0x1f   : > { %p896_p12 = por %p895_p13, %p894_p10 }
  0x21   : > { %p897_p1 = pnand %p896_p12, %p890_p6 }
  0x23   : > { %900 = shalt.err (!%p897_p1)
}
  0x24   : > { %s901_s18 = scalar_lea.vmem %s1120_s25, 512  ;;  %s1000_s22 = smov [#allocation3]  }
  0x25   : > { %p902_p2 = scmp.ne.s32.totalorder %s1120_s25, %s901_s18  ;;  %s906_s24 = sshll.u32 %s1000_s22, 4  ;;  %s907_s24 = int_to_ptr.vmem [resolvable:$false] %s906_s24 }
  0x26   : > { %s908_s13 = scalar_lea.vmem %s907_s24, 1024  ;;  %p909_p9 = scmp.lt.s32.totalorder %s1120_s25, %s907_s24 }
  0x27   : > { %p904_p5 = pnand %p902_p2, %p888_p3  ;;  %p910_p4 = scmp.lt.s32.totalorder %s908_s13, %s901_s18 }
  0x29   : > { %p905_p11 = pneg %p904_p5  ;;  %p911_p7 = por %p910_p4, %p909_p9 }
  0x2b   : > { %p912_p10 = pnand %p911_p7, %p905_p11 }
  0x2d   : > { %915 = shalt.err (!%p912_p10)
}
  0x2e   : > { %s1001_s11 = smov 256   ;;  %s1002_s19 = smov 16  }
  0x2f   : > { %818 = dma.hbm_to_vmem [thread:$0]  (!%p1124_p0), %s1118_s23, 512, %s1120_s25, %s1129_s9, %s1001_s11, %s1001_s11, %s1002_s19  }
  0x30   : > { %p292_p12 = scmp.lt.s32.totalorder %s998_s8, 3  ;;  %p1276_p1 = scmp.ge.s32.totalorder %s998_s8, 1 }
  0x32   : > { %p293_p3 = pnand %p1276_p1, %p292_p12 }
  0x33   : > { %s1161_s12 = sand.u32 (!%p293_p3), 1, %s982_s27  }
  0x34   : > { %296 = sbr.rel (%p293_p3) target bundleno = 557 (0x22d), region = 48  ;;  %s780_s20 = sshll.u32 (!%p293_p3), %s1161_s12, 5 }
  0x35   : > { %s299_s21 = scalar_lea.sflag (!%p293_p3), [#allocation4], %s1161_s12  ;;  %s302_s18 = scalar_lea.vmem (!%p293_p3), [#allocation3], %s780_s20 }
  0x3b   : > { %969 = dma.done.wait (%p1096_p8), %s299_s21, 512  }
  0x3c   : > { %971 = vsyncadd (%p1096_p8), %s299_s21, 4294966784  ;;  %p344_p9 = scmp.lt.s32.totalorder %s990_s29, 1  ;;  %v1003_v0 = vmov 0.0   ;;  %v1004_v1 = vmov 0   ;;  %v355_v2 = vld [vmem:[%s302_s18 + $0x8] sm:$0xff]  ;;  %v357_v3 = vld [vmem:[%s302_s18 + $0x18] sm:$0xff]  ;;  %v641_v52 = vlaneseq }
  0x3d   : > { %435 = vmatprep.mubr.f32.mxu1 %v1003_v0  ;;  %519 = vmatprep.mubr.f32.mxu0 %v1003_v0  ;;  %vm364_vm0 = vcmask 64512   ;;  %v799_v5 = vpack.c.bf16 %v357_v3, %v355_v2  ;;  %v354_v6 = vld [vmem:[%s302_s18] sm:$0xff]  ;;  %v356_v7 = vld [vmem:[%s302_s18 + $0x10] sm:$0xff]  ;;  %vm448_vm1 = vcmask 130048   ;;  %v363_v13 = vld [vmem:[%s1265_s3 + $0x8] sm:$0xff]  ;;  %s553_s24 = sld [smem:[#allocation2]] }
  0x3e   : > { %s345_s23 = scalar_select %p344_p9, %s990_s29, 1  ;;  %877 = vset.pattern.permute.xlu0 %v1004_v1  ;;  %v801_v9 = vpack.c.bf16 %v356_v7, %v354_v6  ;;  %v362_v10 = vld [vmem:[%s1265_s3] sm:$0xff]  ;;  %v533_v14 = vld [vmem:[%s1266_s4 + $0x8] sm:$0xff]  ;;  %v642_v53 = vshrl.u32 %v641_v52, 7 }
  0x3f   : > { %800 = vmatprep.subr.bf16.mxu0 %v799_v5  ;;  %v532_v11 = vld [vmem:[%s1266_s4] sm:$0xff]  ;;  %v361_v15 = vld [vmem:[%s1264_s2 + $0x8] sm:$0xff]  ;;  %s781_s13 = sshll.u32 %s1161_s12, 4  ;;  %s798_s11 = sshll.u32 %s990_s29, 8 }
  0x40   : > { %s797_s25 = sshll.u32 %s345_s23, 4  ;;  %802 = vmatpush1.bf16.msra.mxu0 %v801_v9  ;;  %v360_v12 = vld [vmem:[%s1264_s2] sm:$0xff]  ;;  %536 = vperm.xlu0 %877, %v532_v11   ;;  %v643_v54 = vsub.s32 0, %v642_v53  ;;  %s341_s19 = scalar_lea.vmem [#allocation6], %s781_s13 }
  0x41   : > { %s351_s22 = scalar_lea.vmem %s1263_s1, %s797_s25  ;;  %v552_v40 = vld [vmem:[%s1267_s5] sm:$0x1]  ;;  %s670_s20 = sshll.u32 %s341_s19, 4  ;;  %s1215_s20 = int_to_ptr.vmem [resolvable:$true] %s670_s20 }
  0x42   : > { %v1174_v4 = vld [vmem:[%s351_s22 + $0x8] sm:$0xff]  ;;  %v1177_v8 = vld [vmem:[%s351_s22] sm:$0xff]  ;;  %s1213_s23 = scalar_lea.hbm %s1269_s7, %s798_s11  ;;  %s654_s29 = scalar_lea.sflag [#allocation5], %s1161_s12 }
  0x43   : > { %371 = vmatprep.subr.mxu1 %v1174_v4  ;;  %786 = vmatmul.mubr.msk.f32.vlgmr.msra.gmra.mrb[0].mxu0 %vm448_vm1, %v360_v12  ;;  %v554_v41 = vstv %s553_s24  ;;  %s916_s25 = scalar_lea.vmem %s1215_s20, 256  ;;  %p1277_p11 = scmp.ne.s32.totalorder %s1273_s15, 0 }
  0x44   : > { %372 = vmatpush1.msra.mxu1 %v1177_v8  ;;  %525 = vmatprep.mubr.f32.mxu0 %v1003_v0  ;;  %p917_p8 = scmp.ne.s32.totalorder %s1215_s20, %s916_s25  ;;  %s1005_s6 = smov [#allocation6]  }
  0x45   : > { %784 = vmatmul.mubr.msk.f32.vlgmr.msra.gmra.mrb[0].mxu1 %vm364_vm0, %v362_v10  ;;  %541 = vperm.xlu0 %877, %v533_v14   ;;  %s920_s9 = sshll.u32 %s1005_s6, 4  ;;  %s921_s9 = int_to_ptr.vmem [resolvable:$false] %s920_s9 }
  0x46   : > { %441 = vmatprep.mubr.f32.mxu1 %v1003_v0  ;;  %p918_p0 = pnand %p917_p8, %p1277_p11  ;;  %s922_s22 = scalar_lea.vmem %s921_s9, 512 }
  0x47   : > { %787 = vmatmul.mubr.msk.f32.gmra.mrb[2].mxu0 %vm448_vm1, %v361_v15  ;;  %p923_p13 = scmp.lt.s32.totalorder %s1215_s20, %s921_s9  ;;  %p924_p2 = scmp.lt.s32.totalorder %s922_s22, %s916_s25 }
  0x48   : > { %p919_p6 = pneg %p918_p0 }
  0x49   : > { %785 = vmatmul.mubr.msk.f32.gmra.mrb[2].mxu1 %vm364_vm0, %v363_v13  ;;  %p925_p5 = por %p924_p2, %p923_p13 }
  0x4a   : > { %622 = vmatprep.mubr.f32.mxu1 %v1003_v0 }
  0x4b   : > { %p926_p4 = pnand %p925_p5, %p919_p6 }
  0xbf   : > { %v537_v18 = vpop.permute.xlu0 %536 }
  0xc4   : > { %v542_v30 = vpop.permute.xlu0 %541 }
 0x116   : > { %v521_v19 = vpop.f32.mrb[0].mxu0 }
 0x117   : > { %v523_v22 = vpop.f32.mrb[1].mxu0 }
 0x118   : > { %v437_v16 = vpop.f32.mrb[0].mxu1 }
 0x119   : > { %v439_v17 = vpop.f32.mrb[1].mxu1  ;;  %v522_v21 = vadd.f32 %v521_v19, %v437_v16 }
 0x11a   : > { %v524_v24 = vadd.f32 %v523_v22, %v439_v17  ;;  %v527_v25 = vpop.f32.mrb[2].mxu0 }
 0x11b   : > { %v544_v26 = vadd.f32 %v537_v18, %v522_v21  ;;  %v529_v28 = vpop.f32.mrb[3].mxu0 }
 0x11c   : > { %v443_v20 = vpop.f32.mrb[2].mxu1  ;;  %v545_v29 = vadd.f32 %v537_v18, %v524_v24 }
 0x11d   : > { %v445_v23 = vpop.f32.mrb[3].mxu1  ;;  %v528_v27 = vadd.f32 %v527_v25, %v443_v20  ;;  %v548_v34 = vmax.f32 %v544_v26, 0.0 }
 0x11e   : > { %v530_v31 = vadd.f32 %v529_v28, %v445_v23  ;;  %v549_v36 = vmax.f32 %v545_v29, 0.0 }
 0x11f   : > { %v546_v32 = vadd.f32 %v542_v30, %v528_v27 }
 0x120   : > { %v547_v33 = vadd.f32 %v542_v30, %v530_v31 }
 0x121   : > { %v550_v35 = vmax.f32 %v546_v32, 0.0 }
 0x122   : > { %v551_v37 = vmax.f32 %v547_v33, 0.0 }
 0x123   : > { %v805_v38 = vpack.c.bf16 %v550_v35, %v548_v34 }
 0x124   : > { %v803_v39 = vpack.c.bf16 %v551_v37, %v549_v36 }
 0x126   : > { %804 = vmatprep.subr.bf16.mxu1 %v803_v39 }
 0x127   : > { %806 = vmatpush1.bf16.msra.mxu1 %v805_v38 }
 0x12a   : > { %788 = vmatmul.mubr.msk.f32.vlgmr.msra.gmra.mrb[4].mxu1 %vm448_vm1, %v552_v40 }
 0x1fd   : > { %v624_v42 = vpop.f32.mrb[4].mxu1 }
 0x1fe   : > { %v625_v43 = vadd.f32 %v624_v42, %v554_v41  ;;  %v626_v44 = vpop.f32.mrb[5].mxu1 }
 0x1ff   : > { %v627_v45 = vadd.f32 %v626_v44, %v554_v41 }
 0x200   : > { %v789_v46 = vmul.f32 -1.442695, %v625_v43 }
 0x201   : > { %v790_v47 = vmul.f32 -1.442695, %v627_v45 }
 0x202   : > { %878 = vpow2.f32 %v789_v46 }
 0x203   : > { %880 = vpow2.f32 %v790_v47 }
 0x20c   : > { %v879_v48 = vpop.eup %878 }
 0x20d   : > { %v881_v49 = vpop.eup %880  ;;  %v635_v50 = vadd.f32 1.0, %v879_v48 }
 0x20e   : > { %v636_v51 = vadd.f32 1.0, %v881_v49 }
 0x20f   : > { %882 = vrcp.f32 %v635_v50 }
 0x210   : > { %884 = vrcp.f32 %v636_v51 }
 0x219   : > { %v883_v55 = vpop.eup %882 }
 0x21a   : > { %v885_v56 = vpop.eup %884  ;;  %v644_v57 = vrot.slane %v883_v55, %v643_v54 }
 0x21b   : > { %v648_v58 = vrot.slane %v885_v56, %v643_v54 }
 0x21c   : > { %v649_v59 = vmul.f32 %v644_v57, %v1177_v8 }
 0x21d   : > { %v650_v60 = vmul.f32 %v648_v58, %v1174_v4 }
 0x21e   : > { %651 = vst [vmem:[%s341_s19] sm:$0xff] %v649_v59 }
 0x21f   : > { %652 = vst [vmem:[%s341_s19 + $0x8] sm:$0xff] %v650_v60 }
 0x220   : > { %929 = shalt.err (!%p926_p4)
}
 0x221   : > { %s930_s12 = scalar_lea.hbm %s1213_s23, 256  ;;  %s934_s13 = scalar_lea.hbm %s1269_s7, 512 }
 0x222   : > { %p931_p7 = scmp.ne.s32.totalorder %s1213_s23, %s930_s12  ;;  %p935_p1 = scmp.lt.u32.totalorder %s1213_s23, %s1269_s7 }
 0x223   : > { %p936_p3 = scmp.lt.u32.totalorder %s934_s13, %s930_s12  ;;  %p938_p8 = scmp.lt.u32.totalorder %s930_s12, %s1213_s23 }
 0x224   : > { %p932_p10 = pnand %p931_p7, %p1277_p11 }
 0x225   : > { %p937_p9 = por %p936_p3, %p935_p1 }
 0x226   : > { %p933_p12 = pneg %p932_p10 }
 0x227   : > { %p939_p0 = por %p938_p8, %p937_p9 }
 0x229   : > { %p940_p6 = pnand %p939_p0, %p933_p12 }
 0x22b   : > { %943 = shalt.err (!%p940_p6)
}
 0x22c   : > { %813 = dma.vmem_to_hbm [thread:$0]  (%p1277_p11), %s1215_s20, 256, %s1213_s23, %s654_s29  }
 0x22d PF: > { %s682_s21 = sand.u32 1, %s978_s26   ;;  %p1278_p13 = scmp.ne.s32.totalorder %s1274_s17, 0 }
 0x22e   : > { %p1279_p2 = scmp.ge.s32.totalorder %s998_s8, 2  ;;  %s683_s18 = scalar_lea.sflag [#allocation5], %s682_s21 }
 0x230   : > { %p820_p5 = pnand %p1279_p2, %p1278_p13 }
 0x232   : > { %973 = dma.done.wait (!%p820_p5), %s683_s18, 256  }
 0x233   : > { %975 = vsyncadd (!%p820_p5), %s683_s18, 4294967040  ;;  %s24_s8 = sadd.s32 1, %s998_s8   ;;  %s1280_s26 = smov %s982_s27 }
 0x234   : > { %p21_p4 = scmp.ge.s32.totalorder %s24_s8, 4   ;;  %s1281_s27 = smov %s986_s28 }
 0x235   : > { %s1282_s28 = smov %s1105_s16  ;;  %s1283_s29 = smov %s994_s30 }
 0x236   : > { %s1284_s30 = smov %s1286_s10  ;;  %23 = sbr.rel (!%p21_p4) target bundleno = 8 (0x8), region = 96 }
 0x23d   :  { %688 = vsyncpa [#allocation4], 1 }
 0x23e   :  { %690 = vsyncpa [#allocation4 + $0x1], 1 }
 0x23f   :  { %691 = vsyncpa [#allocation5], 1 }
 0x240   :  { %693 = vsyncpa [#allocation5 + $0x1], 1 }

</bundles_post_ra>
